<compile_context>
chip_gen: v5e
topology: v5e:2x2
jax: 0.10.0
libtpu: 0.0.40
codegen_flags: <defaults>
</compile_context>

<pallas_src>
import math
import functools
import jax
import jax.numpy as jnp
from jax.experimental import pallas as pl
from jax.experimental.pallas import tpu as pltpu

_LN_EPS = 1e-5  # torch.nn.LayerNorm default


def _erf_approx(z):
    """erf via Abramowitz & Stegun 7.1.26 (|err| <= 1.5e-7).

    Built only from exp (EUP) + VPU arithmetic, so it is guaranteed to lower in
    Mosaic while matching torch's exact-erf GELU to ~1e-7.
    """
    a1, a2, a3, a4, a5 = 0.254829592, -0.284496736, 1.421413741, -1.453152027, 1.061405429
    p = 0.3275911
    sgn = jnp.where(z >= 0.0, 1.0, -1.0).astype(jnp.float32)
    az = jnp.abs(z)
    t = 1.0 / (1.0 + p * az)
    poly = ((((a5 * t + a4) * t + a3) * t + a2) * t + a1) * t
    return sgn * (1.0 - poly * jnp.exp(-az * az))


def _patch_mixer_kernel(x_ref, g_ref, b_ref, w1_ref, b1_ref, w2_ref, b2_ref, o_ref, *, inv_d):
    # x: (TM, D)  gamma/beta: (1, D)  w1: (D, Hd)  b1: (1, Hd)  w2: (Hd, D)  b2: (1, D)
    inv_d = jnp.float32(inv_d)
    xf = x_ref[...].astype(jnp.float32)

    # --- LayerNorm over the last (lane) dim, f32 math, one 1/D multiply ---
    mean = jnp.sum(xf, axis=-1, keepdims=True) * inv_d
    xc = xf - mean
    var = jnp.sum(xc * xc, axis=-1, keepdims=True) * inv_d
    y = xc * jax.lax.rsqrt(var + jnp.float32(_LN_EPS))
    y = y * g_ref[...].astype(jnp.float32) + b_ref[...].astype(jnp.float32)

    # --- Linear 1 (MXU): operands in the weights' dtype (bf16-friendly),
    #     f32 accumulation via preferred_element_type ---
    h = jnp.dot(y.astype(w1_ref.dtype), w1_ref[...], preferred_element_type=jnp.float32)
    h = h + b1_ref[...].astype(jnp.float32)

    # --- exact (erf) GELU, matches torch.nn.GELU default to ~1e-7 ---
    h = 0.5 * h * (1.0 + _erf_approx(h * jnp.float32(1.0 / math.sqrt(2.0))))

    # --- Linear 2 (MXU) ---
    o = jnp.dot(h.astype(w2_ref.dtype), w2_ref[...], preferred_element_type=jnp.float32)
    o = o + b2_ref[...].astype(jnp.float32)

    # --- residual in patch space: fold with stride == kernel is a bijection, so
    #     fold(o) + x == fold(o + unfold(x)) ---
    o_ref[...] = (xf + o).astype(o_ref.dtype)


def _round_up(n, m):
    return ((n + m - 1) // m) * m


def patch_mixer_block(x, gamma, beta, w1, b1, w2, b2, *, patch_size, row_tile=1024):
    """PatchMixerBlock forward. x: (B, C, H, W) with H, W divisible by patch_size."""
    ph, pw = (patch_size, patch_size) if isinstance(patch_size, int) else tuple(patch_size)
    B, C, H, W = x.shape
    nh, nw = H // ph, W // pw
    L = nh * nw
    D = C * ph * pw
    Hd = w1.shape[1]

    # unfold (stride == kernel) -> (B*L, D); torch ordering: D=(C,ph,pw), L row-major.
    xp = x.reshape(B, C, nh, ph, nw, pw).transpose(0, 2, 4, 1, 3, 5).reshape(B * L, D)

    rows = B * L
    rows_p = _round_up(rows, 8)
    if rows_p != rows:
        # tiny (<8 row) alignment pad only; no full padded copy for tile alignment
        xp = jnp.pad(xp, ((0, rows_p - rows), (0, 0)))

    x_bytes = xp.dtype.itemsize
    w_bytes = w1.dtype.itemsize
    weight_bytes = (D * Hd + Hd * D) * w_bytes + (3 * D + Hd) * w_bytes

    # --- row tile selection -------------------------------------------------
    tm = min(_round_up(row_tile, 8), rows_p)
    # v7x megacore: make sure the 'parallel' row axis has >= 2 grid steps.
    if rows_p > 8 and pl.cdiv(rows_p, tm) < 2:
        tm = _round_up(pl.cdiv(rows_p, 2), 8)
    # Rebalance so the tail tile wastes <= 7 rows instead of up to tm-1.
    steps = pl.cdiv(rows_p, tm)
    if steps > 1:
        tm = _round_up(pl.cdiv(rows_p, steps), 8)

    # --- VMEM budgeting (v7x: 64 MiB physical, 32 MiB scoped; v5e: 16 MiB scoped) ---
    big_weights = weight_bytes > (8 << 20)
    w_buffers = 1 if big_weights else 2

    def vmem_est(tm_):
        act = 2 * (2 * tm_ * D * x_bytes)       # x + out tiles, double-buffered
        mid = 3 * tm_ * max(Hd, D) * 4          # f32 intermediates (y, h, o)
        return act + mid + w_buffers * weight_bytes

    budget = 40 << 20
    while vmem_est(tm) > budget and tm > 64:
        tm = _round_up(tm // 2, 8)
    grid_m = pl.cdiv(rows_p, tm)
    vmem_limit = int(min(56 << 20, max(32 << 20, int(vmem_est(tm) * 1.5))))

    # Constant index_map => weights fetched once; single-buffer them when large.
    wspec_kwargs = {}
    if big_weights and hasattr(pl, "Buffered"):
        wspec_kwargs = {"pipeline_mode": pl.Buffered(1)}

    cost = pl.CostEstimate(
        flops=int(4 * rows_p * D * Hd + 10 * rows_p * D),
        transcendentals=int(rows_p * (Hd + 1)),
        bytes_accessed=int(2 * rows_p * D * x_bytes + weight_bytes),
    )

    out = pl.pallas_call(
        functools.partial(_patch_mixer_kernel, inv_d=1.0 / D),
        out_shape=jax.ShapeDtypeStruct((rows_p, D), x.dtype),
        grid=(grid_m,),
        in_specs=[
            pl.BlockSpec((tm, D), lambda i: (i, 0)),                   # x rows (pipelined)
            pl.BlockSpec((1, D), lambda i: (0, 0)),                    # LN gamma (resident)
            pl.BlockSpec((1, D), lambda i: (0, 0)),                    # LN beta
            pl.BlockSpec((D, Hd), lambda i: (0, 0), **wspec_kwargs),   # w1 (resident)
            pl.BlockSpec((1, Hd), lambda i: (0, 0)),                   # b1
            pl.BlockSpec((Hd, D), lambda i: (0, 0), **wspec_kwargs),   # w2 (resident)
            pl.BlockSpec((1, D), lambda i: (0, 0)),                    # b2
        ],
        out_specs=pl.BlockSpec((tm, D), lambda i: (i, 0)),
        input_output_aliases={0: 0},                                    # out reuses xp's buffer
        compiler_params=pltpu.CompilerParams(
            dimension_semantics=("parallel",),
            vmem_limit_bytes=vmem_limit),
        cost_estimate=cost,
    )(xp, gamma.reshape(1, D), beta.reshape(1, D),
      w1, b1.reshape(1, Hd), w2, b2.reshape(1, D))

    out = out[:rows]
    # fold back -> (B, C, H, W); residual already added inside the kernel.
    y = out.reshape(B, nh, nw, C, ph, pw).transpose(0, 3, 1, 4, 2, 5)
    return y.reshape(B, C, H, W)


def init_params(key, num_channel, patch_size, hidden_ratio=2, dtype=jnp.float32):
    """Mirror PatchMixerBlock init: LayerNorm(ones/zeros) + nn.Linear uniform init."""
    D = num_channel * patch_size * patch_size
    Hd = hidden_ratio * D
    k1, k2, k3, k4 = jax.random.split(key, 4)
    gamma = jnp.ones((D,), dtype)
    beta = jnp.zeros((D,), dtype)
    bound1 = 1.0 / math.sqrt(D)
    bound2 = 1.0 / math.sqrt(Hd)
    # Stored transposed: (in, out) so the kernel computes x @ W.
    w1 = jax.random.uniform(k1, (D, Hd), dtype, -bound1, bound1)
    b1 = jax.random.uniform(k2, (Hd,), dtype, -bound1, bound1)
    w2 = jax.random.uniform(k3, (Hd, D), dtype, -bound2, bound2)
    b2 = jax.random.uniform(k4, (D,), dtype, -bound2, bound2)
    return gamma, beta, w1, b1, w2, b2


def _reference(x, gamma, beta, w1, b1, w2, b2, patch_size):
    """Pure-JAX mirror of PatchMixerBlock.forward (unfold -> LN -> MLP -> fold -> +x)."""
    ph = pw = patch_size
    B, C, H, W = x.shape
    nh, nw = H // ph, W // pw
    D = C * ph * pw
    y = x.reshape(B, C, nh, ph, nw, pw).transpose(0, 2, 4, 1, 3, 5).reshape(B, nh * nw, D)
    mean = y.mean(-1, keepdims=True)
    var = ((y - mean) ** 2).mean(-1, keepdims=True)
    y = (y - mean) / jnp.sqrt(var + _LN_EPS) * gamma + beta
    h = jnp.dot(y, w1, precision=jax.lax.Precision.HIGHEST) + b1
    h = 0.5 * h * (1.0 + jax.lax.erf(h * (1.0 / math.sqrt(2.0))))
    o = jnp.dot(h, w2, precision=jax.lax.Precision.HIGHEST) + b2
    o = o.reshape(B, nh, nw, C, ph, pw).transpose(0, 3, 1, 4, 2, 5).reshape(B, C, H, W)
    return x + o


if __name__ == "__main__":
    key = jax.random.PRNGKey(0)
    kx, kp = jax.random.split(key)

    # batch=2, channels=8, spatial 16x16, patch 4 -> D = 8*4*4 = 128 (lane-dense),
    # hidden = 256, rows = 2 * (4*4) = 32 (split into 2 grid steps for megacore).
    batch, channels, spatial, patch = 2, 8, 16, 4
    x = jax.random.normal(kx, (batch, channels, spatial, spatial), dtype=jnp.float32)
    gamma, beta, w1, b1, w2, b2 = init_params(kp, channels, patch, hidden_ratio=2)

    fwd = jax.jit(functools.partial(patch_mixer_block, patch_size=patch))
    ref = _reference(x, gamma, beta, w1, b1, w2, b2, patch)

    # 1) f32 weights: matches the torch module's numerics.
    out_f32 = jax.block_until_ready(fwd(x, gamma, beta, w1, b1, w2, b2))
    assert out_f32.shape == x.shape
    err_f32 = float(jnp.max(jnp.abs(out_f32 - ref)))
    assert err_f32 < 2e-2, f"f32 max_err={err_f32}"

    # 2) bf16 weights (recommended perf config): f32 accumulation in-kernel,
    #    checked against the f32 reference with a looser precision budget.
    w1b, b1b, w2b, b2b = (t.astype(jnp.bfloat16) for t in (w1, b1, w2, b2))
    out_bf16 = jax.block_until_ready(fwd(x, gamma, beta, w1b, b1b, w2b, b2b))
    err_bf16 = float(jnp.max(jnp.abs(out_bf16 - ref)))
    assert err_bf16 < 6e-2, f"bf16 max_err={err_bf16}"

    print("KERNEL_OK")
</pallas_src>

<mosaic_0001>
module attributes {stable_mosaic.version = 11 : i64} {
  func.func @_patch_mixer_kernel(%arg0: i32, %arg1: memref<16x128xf32, #tpu.memory_space<vmem>>, %arg2: memref<1x128xf32, #tpu.memory_space<vmem>>, %arg3: memref<1x128xf32, #tpu.memory_space<vmem>>, %arg4: memref<128x256xf32, #tpu.memory_space<vmem>>, %arg5: memref<1x256xf32, #tpu.memory_space<vmem>>, %arg6: memref<256x128xf32, #tpu.memory_space<vmem>>, %arg7: memref<1x128xf32, #tpu.memory_space<vmem>>, %arg8: memref<16x128xf32, #tpu.memory_space<vmem>>) attributes {dimension_semantics = [#tpu.dimension_semantics<parallel>], iteration_bounds = array<i64: 2>, scalar_prefetch = 0 : i64, scratch_operands = 0 : i64, tpu.core_type = #tpu.core_type<tc>, window_params = [{transform_indices = @transform_0, window_bounds = array<i64: 16, 128>}, {pipeline_mode = #tpu.pipeline_mode<synchronous>, transform_indices = @transform_1, window_bounds = array<i64: 1, 128>}, {pipeline_mode = #tpu.pipeline_mode<synchronous>, transform_indices = @transform_2, window_bounds = array<i64: 1, 128>}, {pipeline_mode = #tpu.pipeline_mode<synchronous>, transform_indices = @transform_3, window_bounds = array<i64: 128, 256>}, {pipeline_mode = #tpu.pipeline_mode<synchronous>, transform_indices = @transform_4, window_bounds = array<i64: 1, 256>}, {pipeline_mode = #tpu.pipeline_mode<synchronous>, transform_indices = @transform_5, window_bounds = array<i64: 256, 128>}, {pipeline_mode = #tpu.pipeline_mode<synchronous>, transform_indices = @transform_6, window_bounds = array<i64: 1, 128>}, {transform_indices = @transform_7, window_bounds = array<i64: 16, 128>}]} {
    %c0 = arith.constant 0 : index
    %c0_0 = arith.constant 0 : index
    %0 = vector.load %arg1[%c0, %c0_0] : memref<16x128xf32, #tpu.memory_space<vmem>>, vector<16x128xf32>
    %cst = arith.constant dense<0.000000e+00> : vector<16xf32>
    %1 = vector.multi_reduction <add>, %0, %cst [1] : vector<16x128xf32> to vector<16xf32>
    %2 = vector.shape_cast %1 : vector<16xf32> to vector<16x1xf32>
    %cst_1 = arith.constant 7.812500e-03 : f32
    %3 = vector.broadcast %cst_1 : f32 to vector<16x1xf32>
    %4 = arith.mulf %2, %3 : vector<16x1xf32>
    %5 = vector.broadcast %4 : vector<16x1xf32> to vector<16x128xf32>
    %6 = arith.subf %0, %5 : vector<16x128xf32>
    %7 = arith.mulf %6, %6 : vector<16x128xf32>
    %cst_2 = arith.constant dense<0.000000e+00> : vector<16xf32>
    %8 = vector.multi_reduction <add>, %7, %cst_2 [1] : vector<16x128xf32> to vector<16xf32>
    %9 = vector.shape_cast %8 : vector<16xf32> to vector<16x1xf32>
    %cst_3 = arith.constant 7.812500e-03 : f32
    %10 = vector.broadcast %cst_3 : f32 to vector<16x1xf32>
    %11 = arith.mulf %9, %10 : vector<16x1xf32>
    %cst_4 = arith.constant 9.99999974E-6 : f32
    %12 = vector.broadcast %cst_4 : f32 to vector<16x1xf32>
    %13 = arith.addf %11, %12 : vector<16x1xf32>
    %14 = math.rsqrt %13 : vector<16x1xf32>
    %15 = vector.broadcast %14 : vector<16x1xf32> to vector<16x128xf32>
    %16 = arith.mulf %6, %15 : vector<16x128xf32>
    %c0_5 = arith.constant 0 : index
    %c0_6 = arith.constant 0 : index
    %17 = vector.load %arg2[%c0_5, %c0_6] : memref<1x128xf32, #tpu.memory_space<vmem>>, vector<1x128xf32>
    %18 = vector.broadcast %17 : vector<1x128xf32> to vector<16x128xf32>
    %19 = arith.mulf %16, %18 : vector<16x128xf32>
    %c0_7 = arith.constant 0 : index
    %c0_8 = arith.constant 0 : index
    %20 = vector.load %arg3[%c0_7, %c0_8] : memref<1x128xf32, #tpu.memory_space<vmem>>, vector<1x128xf32>
    %21 = vector.broadcast %20 : vector<1x128xf32> to vector<16x128xf32>
    %22 = arith.addf %19, %21 : vector<16x128xf32>
    %c0_9 = arith.constant 0 : index
    %c0_10 = arith.constant 0 : index
    %23 = vector.load %arg4[%c0_9, %c0_10] : memref<128x256xf32, #tpu.memory_space<vmem>>, vector<128x256xf32>
    %cst_11 = arith.constant dense<0.000000e+00> : vector<16x256xf32>
    %24 = tpu.matmul %22, %23, %cst_11 {dimension_numbers = #tpu.dot_dimension_numbers<[1], [0], [0], [1], [0, 0, 1, 1], [], []>} : vector<16x128xf32>, vector<128x256xf32>, vector<16x256xf32> -> vector<16x256xf32>
    %c0_12 = arith.constant 0 : index
    %c0_13 = arith.constant 0 : index
    %25 = vector.load %arg5[%c0_12, %c0_13] : memref<1x256xf32, #tpu.memory_space<vmem>>, vector<1x256xf32>
    %26 = vector.broadcast %25 : vector<1x256xf32> to vector<16x256xf32>
    %27 = arith.addf %24, %26 : vector<16x256xf32>
    %cst_14 = arith.constant 5.000000e-01 : f32
    %28 = vector.broadcast %cst_14 : f32 to vector<16x256xf32>
    %29 = arith.mulf %28, %27 : vector<16x256xf32>
    %cst_15 = arith.constant 0.707106769 : f32
    %30 = vector.broadcast %cst_15 : f32 to vector<16x256xf32>
    %31 = arith.mulf %27, %30 : vector<16x256xf32>
    %cst_16 = arith.constant 0.000000e+00 : f32
    %32 = vector.broadcast %cst_16 : f32 to vector<16x256xf32>
    %33 = arith.cmpf oge, %31, %32 : vector<16x256xf32>
    %cst_17 = arith.constant 1.000000e+00 : f32
    %cst_18 = arith.constant -1.000000e+00 : f32
    %34 = vector.broadcast %cst_17 : f32 to vector<16x256xf32>
    %35 = vector.broadcast %cst_18 : f32 to vector<16x256xf32>
    %36 = arith.select %33, %34, %35 : vector<16x256xi1>, vector<16x256xf32>
    %37 = math.absf %31 : vector<16x256xf32>
    %cst_19 = arith.constant 0.327591091 : f32
    %38 = vector.broadcast %cst_19 : f32 to vector<16x256xf32>
    %39 = arith.mulf %38, %37 : vector<16x256xf32>
    %cst_20 = arith.constant 1.000000e+00 : f32
    %40 = vector.broadcast %cst_20 : f32 to vector<16x256xf32>
    %41 = arith.addf %40, %39 : vector<16x256xf32>
    %cst_21 = arith.constant 1.000000e+00 : f32
    %42 = vector.broadcast %cst_21 : f32 to vector<16x256xf32>
    %43 = arith.divf %42, %41 : vector<16x256xf32>
    %cst_22 = arith.constant 1.06140542 : f32
    %44 = vector.broadcast %cst_22 : f32 to vector<16x256xf32>
    %45 = arith.mulf %44, %43 : vector<16x256xf32>
    %cst_23 = arith.constant -1.45315206 : f32
    %46 = vector.broadcast %cst_23 : f32 to vector<16x256xf32>
    %47 = arith.addf %45, %46 : vector<16x256xf32>
    %48 = arith.mulf %47, %43 : vector<16x256xf32>
    %cst_24 = arith.constant 1.42141378 : f32
    %49 = vector.broadcast %cst_24 : f32 to vector<16x256xf32>
    %50 = arith.addf %48, %49 : vector<16x256xf32>
    %51 = arith.mulf %50, %43 : vector<16x256xf32>
    %cst_25 = arith.constant -0.284496725 : f32
    %52 = vector.broadcast %cst_25 : f32 to vector<16x256xf32>
    %53 = arith.addf %51, %52 : vector<16x256xf32>
    %54 = arith.mulf %53, %43 : vector<16x256xf32>
    %cst_26 = arith.constant 0.254829586 : f32
    %55 = vector.broadcast %cst_26 : f32 to vector<16x256xf32>
    %56 = arith.addf %54, %55 : vector<16x256xf32>
    %57 = arith.mulf %56, %43 : vector<16x256xf32>
    %cst_27 = arith.constant 0.000000e+00 : f32
    %58 = vector.broadcast %cst_27 : f32 to vector<16x256xf32>
    %59 = arith.subf %58, %37 : vector<16x256xf32>
    %60 = arith.mulf %59, %37 : vector<16x256xf32>
    %61 = math.exp %60 : vector<16x256xf32>
    %62 = arith.mulf %57, %61 : vector<16x256xf32>
    %cst_28 = arith.constant 1.000000e+00 : f32
    %63 = vector.broadcast %cst_28 : f32 to vector<16x256xf32>
    %64 = arith.subf %63, %62 : vector<16x256xf32>
    %65 = arith.mulf %36, %64 : vector<16x256xf32>
    %cst_29 = arith.constant 1.000000e+00 : f32
    %66 = vector.broadcast %cst_29 : f32 to vector<16x256xf32>
    %67 = arith.addf %66, %65 : vector<16x256xf32>
    %68 = arith.mulf %29, %67 : vector<16x256xf32>
    %c0_30 = arith.constant 0 : index
    %c0_31 = arith.constant 0 : index
    %69 = vector.load %arg6[%c0_30, %c0_31] : memref<256x128xf32, #tpu.memory_space<vmem>>, vector<256x128xf32>
    %cst_32 = arith.constant dense<0.000000e+00> : vector<16x128xf32>
    %70 = tpu.matmul %68, %69, %cst_32 {dimension_numbers = #tpu.dot_dimension_numbers<[1], [0], [0], [1], [0, 0, 1, 1], [], []>} : vector<16x256xf32>, vector<256x128xf32>, vector<16x128xf32> -> vector<16x128xf32>
    %c0_33 = arith.constant 0 : index
    %c0_34 = arith.constant 0 : index
    %71 = vector.load %arg7[%c0_33, %c0_34] : memref<1x128xf32, #tpu.memory_space<vmem>>, vector<1x128xf32>
    %72 = vector.broadcast %71 : vector<1x128xf32> to vector<16x128xf32>
    %73 = arith.addf %70, %72 : vector<16x128xf32>
    %74 = arith.addf %0, %73 : vector<16x128xf32>
    %c0_35 = arith.constant 0 : index
    %c0_36 = arith.constant 0 : index
    %75 = vector.load %arg8[%c0_35, %c0_36] : memref<16x128xf32, #tpu.memory_space<vmem>>, vector<16x128xf32>
    tpu.vector_store %arg8[%c0_35, %c0_36], %74 {strides = array<i32>} : memref<16x128xf32, #tpu.memory_space<vmem>>, vector<16x128xf32>,
    return
  }
  func.func @transform_0(%arg0: i32) -> (i32, i32) {
    %c0_i32 = arith.constant 0 : i32
    %c0_i32_0 = arith.constant 0 : i32
    return %arg0, %c0_i32 : i32, i32
  }
  func.func @transform_1(%arg0: i32) -> (i32, i32) {
    %c0_i32 = arith.constant 0 : i32
    %c0_i32_0 = arith.constant 0 : i32
    %c0_i32_1 = arith.constant 0 : i32
    return %c0_i32, %c0_i32_0 : i32, i32
  }
  func.func @transform_2(%arg0: i32) -> (i32, i32) {
    %c0_i32 = arith.constant 0 : i32
    %c0_i32_0 = arith.constant 0 : i32
    %c0_i32_1 = arith.constant 0 : i32
    return %c0_i32, %c0_i32_0 : i32, i32
  }
  func.func @transform_3(%arg0: i32) -> (i32, i32) {
    %c0_i32 = arith.constant 0 : i32
    %c0_i32_0 = arith.constant 0 : i32
    %c0_i32_1 = arith.constant 0 : i32
    return %c0_i32, %c0_i32_0 : i32, i32
  }
  func.func @transform_4(%arg0: i32) -> (i32, i32) {
    %c0_i32 = arith.constant 0 : i32
    %c0_i32_0 = arith.constant 0 : i32
    %c0_i32_1 = arith.constant 0 : i32
    return %c0_i32, %c0_i32_0 : i32, i32
  }
  func.func @transform_5(%arg0: i32) -> (i32, i32) {
    %c0_i32 = arith.constant 0 : i32
    %c0_i32_0 = arith.constant 0 : i32
    %c0_i32_1 = arith.constant 0 : i32
    return %c0_i32, %c0_i32_0 : i32, i32
  }
  func.func @transform_6(%arg0: i32) -> (i32, i32) {
    %c0_i32 = arith.constant 0 : i32
    %c0_i32_0 = arith.constant 0 : i32
    %c0_i32_1 = arith.constant 0 : i32
    return %c0_i32, %c0_i32_0 : i32, i32
  }
  func.func @transform_7(%arg0: i32) -> (i32, i32) {
    %c0_i32 = arith.constant 0 : i32
    %c0_i32_0 = arith.constant 0 : i32
    return %arg0, %c0_i32 : i32, i32
  }
}

</mosaic_0001>

<bundles_post_ra>
// kernel: patch_mixer_block.1
= control target key start
LH: loop header
LB: loop body
LE: loop exit
PB: predicated region body
PF: predicated region fallthrough
CT: control target
= control target key end

     0   :  { %s814_s24 = smov 0   ;;  %s1143_s0 = inlined_call_operand.vmem [shape: f32[32,128], index: 0, kind: input, shape index: {}, may-alias: {0,7}]   ;;  %s1144_s1 = inlined_call_operand.vmem [shape: f32[1,128], index: 1, kind: input, shape index: {}]   ;;  %s1145_s2 = inlined_call_operand.vmem [shape: f32[1,128], index: 2, kind: input, shape index: {}]   ;;  %s1146_s3 = inlined_call_operand.vmem [shape: f32[128,256], index: 3, kind: input, shape index: {}]   ;;  %s1147_s4 = inlined_call_operand.vmem [shape: f32[1,256], index: 4, kind: input, shape index: {}]   ;;  %s1148_s5 = inlined_call_operand.vmem [shape: f32[256,128], index: 5, kind: input, shape index: {}]   ;;  %s1149_s6 = inlined_call_operand.vmem [shape: f32[1,128], index: 6, kind: input, shape index: {}]   ;;  %s1150_s7 = inlined_call_operand.vmem [shape: f32[32,128], index: 7, kind: output, shape index: {}, may-alias: {0,7}]  }
   0x1 LB: > { %s722_s25 = sadd.s32 4294967295, %s771_s24   ;;  %p726_p0 = scmp.ge.s32.totalorder %s771_s24, 1  ;;  %s771_s24 = sphi %s814_s24, %s17_s24  }
   0x2   : > { %p238_p1 = scmp.lt.s32.totalorder %s771_s24, 3 }
   0x4   : > { %p239_p2 = pnand %p726_p0, %p238_p1 }
   0x5   : > { %s727_s26 = sshll.u32 (!%p239_p2), %s722_s25, 1 }
   0x6   : > { %242 = sbr.rel (%p239_p2) target bundleno = 609 (0x261), region = 48  ;;  %p271_p3 = scmp.lt.s32.totalorder (!%p239_p2), %s727_s26, 3 }
   0xb   : > { %s1152_s26 = smov (!%p271_p3, %s727_s26), 3  ;;  %v366_v2 = vld [vmem:[%s1146_s3 + $0xf0] sm:$0xff]  ;;  %v367_v3 = vld [vmem:[%s1146_s3 + $0xf8] sm:$0xff]  ;;  %v364_v4 = vld [vmem:[%s1146_s3 + $0xe0] sm:$0xff] }
   0xc   : > { %s728_s27 = sshll.u32 %s1152_s26, 3  ;;  %374 = vmatpush.msra.mxu0 %v366_v2  ;;  %397 = vmatpush.msra.mxu1 %v367_v3  ;;  %v365_v5 = vld [vmem:[%s1146_s3 + $0xe8] sm:$0xff]  ;;  %v362_v14 = vld [vmem:[%s1146_s3 + $0xd0] sm:$0xff]  ;;  %v363_v15 = vld [vmem:[%s1146_s3 + $0xd8] sm:$0xff] }
   0xd   : > { %s274_s30 = scalar_lea.vmem %s1143_s0, %s728_s27  ;;  %v360_v16 = vld [vmem:[%s1146_s3 + $0xc0] sm:$0xff]  ;;  %v361_v17 = vld [vmem:[%s1146_s3 + $0xc8] sm:$0xff]  ;;  %v358_v18 = vld [vmem:[%s1146_s3 + $0xb0] sm:$0xff]  ;;  %s280_s29 = scalar_lea.vmem %s1150_s7, %s728_s27 }
   0xe   : > { %v830_v0 = vld [vmem:[%s274_s30] sm:$0xff]  ;;  %v833_v1 = vld [vmem:[%s274_s30 + $0x8] sm:$0xff]  ;;  %375 = vmatpush.msra.mxu0 %v364_v4  ;;  %398 = vmatpush.msra.mxu1 %v365_v5  ;;  %v359_v19 = vld [vmem:[%s1146_s3 + $0xb8] sm:$0xff] }
   0xf   : > { %284 = vadd.xlane.f32.xlu0 %v830_v0  ;;  %v356_v20 = vld [vmem:[%s1146_s3 + $0xa0] sm:$0xff]  ;;  %v357_v21 = vld [vmem:[%s1146_s3 + $0xa8] sm:$0xff]  ;;  %v354_v22 = vld [vmem:[%s1146_s3 + $0x90] sm:$0xff] }
  0x10   : > { %376 = vmatpush.msra.mxu0 %v362_v14  ;;  %399 = vmatpush.msra.mxu1 %v363_v15  ;;  %v355_v23 = vld [vmem:[%s1146_s3 + $0x98] sm:$0xff]  ;;  %v352_v24 = vld [vmem:[%s1146_s3 + $0x80] sm:$0xff]  ;;  %v353_v25 = vld [vmem:[%s1146_s3 + $0x88] sm:$0xff] }
  0x11   : > { %v350_v26 = vld [vmem:[%s1146_s3 + $0x70] sm:$0xff]  ;;  %v351_v27 = vld [vmem:[%s1146_s3 + $0x78] sm:$0xff]  ;;  %v348_v28 = vld [vmem:[%s1146_s3 + $0x60] sm:$0xff] }
  0x12   : > { %377 = vmatpush.msra.mxu0 %v360_v16  ;;  %400 = vmatpush.msra.mxu1 %v361_v17  ;;  %v349_v29 = vld [vmem:[%s1146_s3 + $0x68] sm:$0xff]  ;;  %v346_v30 = vld [vmem:[%s1146_s3 + $0x50] sm:$0xff]  ;;  %v347_v31 = vld [vmem:[%s1146_s3 + $0x58] sm:$0xff] }
  0x13   : > { %v344_v32 = vld [vmem:[%s1146_s3 + $0x40] sm:$0xff]  ;;  %v345_v33 = vld [vmem:[%s1146_s3 + $0x48] sm:$0xff]  ;;  %v342_v34 = vld [vmem:[%s1146_s3 + $0x30] sm:$0xff] }
  0x14   : > { %378 = vmatpush.msra.mxu0 %v358_v18  ;;  %401 = vmatpush.msra.mxu1 %v359_v19  ;;  %v343_v35 = vld [vmem:[%s1146_s3 + $0x38] sm:$0xff]  ;;  %v340_v36 = vld [vmem:[%s1146_s3 + $0x20] sm:$0xff]  ;;  %v341_v37 = vld [vmem:[%s1146_s3 + $0x28] sm:$0xff] }
  0x15   : > { %v338_v38 = vld [vmem:[%s1146_s3 + $0x10] sm:$0xff]  ;;  %v339_v39 = vld [vmem:[%s1146_s3 + $0x18] sm:$0xff]  ;;  %v336_v40 = vld [vmem:[%s1146_s3] sm:$0xff] }
  0x16   : > { %379 = vmatpush.msra.mxu0 %v356_v20  ;;  %402 = vmatpush.msra.mxu1 %v357_v21  ;;  %v337_v41 = vld [vmem:[%s1146_s3 + $0x8] sm:$0xff]  ;;  %v742_v56 = vld [vmem:[%s1144_s1] ss:$0 sm:$0xff]  ;;  %v591_v21 = vld [vmem:[%s1148_s5 + $0x58] sm:$0xff] }
  0x17   : > { %286 = vadd.xlane.f32.xlu0 %v833_v1  ;;  %v743_v60 = vld [vmem:[%s1145_s2] ss:$0 sm:$0xff]  ;;  %v593_v15 = vld [vmem:[%s1148_s5 + $0x68] sm:$0xff] }
  0x18   : > { %380 = vmatpush.msra.mxu0 %v354_v22  ;;  %403 = vmatpush.msra.mxu1 %v355_v23  ;;  %v609_v16 = vld [vmem:[%s1148_s5 + $0xe8] sm:$0xff]  ;;  %v592_v17 = vld [vmem:[%s1148_s5 + $0x60] sm:$0xff]  ;;  %v607_v22 = vld [vmem:[%s1148_s5 + $0xd8] sm:$0xff] }
  0x19   : > { %v608_v18 = vld [vmem:[%s1148_s5 + $0xe0] sm:$0xff] }
  0x1a   : > { %381 = vmatpush.msra.mxu0 %v352_v24  ;;  %404 = vmatpush.msra.mxu1 %v353_v25  ;;  %v590_v25 = vld [vmem:[%s1148_s5 + $0x50] sm:$0xff] }
  0x1c   : > { %382 = vmatpush.msra.mxu0 %v350_v26  ;;  %405 = vmatpush.msra.mxu1 %v351_v27  ;;  %v606_v26 = vld [vmem:[%s1148_s5 + $0xd0] sm:$0xff] }
  0x1e   : > { %383 = vmatpush.msra.mxu0 %v348_v28  ;;  %406 = vmatpush.msra.mxu1 %v349_v29  ;;  %v589_v29 = vld [vmem:[%s1148_s5 + $0x48] sm:$0xff] }
  0x20   : > { %384 = vmatpush.msra.mxu0 %v346_v30  ;;  %407 = vmatpush.msra.mxu1 %v347_v31  ;;  %v605_v30 = vld [vmem:[%s1148_s5 + $0xc8] sm:$0xff] }
  0x22   : > { %385 = vmatpush.msra.mxu0 %v344_v32  ;;  %408 = vmatpush.msra.mxu1 %v345_v33  ;;  %v588_v33 = vld [vmem:[%s1148_s5 + $0x40] sm:$0xff] }
  0x24   : > { %386 = vmatpush.msra.mxu0 %v342_v34  ;;  %409 = vmatpush.msra.mxu1 %v343_v35  ;;  %v604_v34 = vld [vmem:[%s1148_s5 + $0xc0] sm:$0xff] }
  0x26   : > { %387 = vmatpush.msra.mxu0 %v340_v36  ;;  %410 = vmatpush.msra.mxu1 %v341_v37 }
  0x28   : > { %388 = vmatpush.msra.mxu0 %v338_v38  ;;  %411 = vmatpush.msra.mxu1 %v339_v39  ;;  %v587_v39 = vld [vmem:[%s1148_s5 + $0x38] sm:$0xff] }
  0x2a   : > { %389 = vmatpush.msra.mxu0 %v336_v40  ;;  %412 = vmatpush.msra.mxu1 %v337_v41  ;;  %v603_v40 = vld [vmem:[%s1148_s5 + $0xb8] sm:$0xff] }
  0x82   : > { %v285_v6 = vpop.xlane.xlu0 %284 }
  0x83   : > { %v288_v7 = vmul.f32 0.0078125, %v285_v6 }
  0x85   : > { %v849_v8 = vsub.f32 %v830_v0, %v288_v7 }
  0x87   : > { %v292_v9 = vmul.f32 %v849_v8, %v849_v8 }
  0x89   : > { %294 = vadd.xlane.f32.xlu1 %v292_v9  ;;  %v595_v9 = vld [vmem:[%s1148_s5 + $0x78] sm:$0xff] }
  0x8a   : > { %v287_v10 = vpop.xlane.xlu0 %286  ;;  %616 = vmatpush.msra.mxu2 %v595_v9 }
  0x8b   : > { %v289_v11 = vmul.f32 0.0078125, %v287_v10  ;;  %v611_v10 = vld [vmem:[%s1148_s5 + $0xf8] sm:$0xff] }
  0x8c   : > { %639 = vmatpush.msra.mxu3 %v611_v10 }
  0x8d   : > { %v854_v12 = vsub.f32 %v833_v1, %v289_v11  ;;  %v594_v11 = vld [vmem:[%s1148_s5 + $0x70] sm:$0xff] }
  0x8e   : > { %617 = vmatpush.msra.mxu2 %v594_v11 }
  0x8f   : > { %v293_v13 = vmul.f32 %v854_v12, %v854_v12 }
  0x90   : > { %618 = vmatpush.msra.mxu2 %v593_v15 }
  0x91   : > { %296 = vadd.xlane.f32.xlu1 %v293_v13 }
  0x92   : > { %619 = vmatpush.msra.mxu2 %v592_v17 }
  0x94   : > { %620 = vmatpush.msra.mxu2 %v591_v21 }
  0x96   : > { %621 = vmatpush.msra.mxu2 %v590_v25 }
  0x98   : > { %622 = vmatpush.msra.mxu2 %v589_v29 }
  0x9a   : > { %623 = vmatpush.msra.mxu2 %v588_v33 }
  0x9c   : > { %624 = vmatpush.msra.mxu2 %v587_v39 }
  0xfc   : > { %v295_v42 = vpop.xlane.xlu1 %294 }
  0xfd   : > { %v298_v43 = vmul.f32 0.0078125, %v295_v42 }
  0xff   : > { %v300_v44 = vadd.f32 1e-05, %v298_v43 }
 0x101   : > { %745 = vrsqrt.f32 %v300_v44  ;;  %vm308_vm1 = vweird.f32 %v300_v44 }
 0x104   : > { %v297_v45 = vpop.xlane.xlu1 %296 }
 0x105   : > { %v299_v46 = vmul.f32 0.0078125, %v297_v45  ;;  %v586_v45 = vld [vmem:[%s1148_s5 + $0x30] sm:$0xff] }
 0x106   : > { %625 = vmatpush.msra.mxu2 %v586_v45 }
 0x107   : > { %v746_v47 = vpop.eup %745  ;;  %v301_v48 = vadd.f32 1e-05, %v299_v46  ;;  %v602_v46 = vld [vmem:[%s1148_s5 + $0xb0] sm:$0xff] }
 0x108   : > { %v303_v49 = vmul.f32 %v746_v47, %v300_v44  ;;  %vm309_vm0 = vweird.f32 %v746_v47 }
 0x109   : > { %747 = vrsqrt.f32 %v301_v48  ;;  %vm310_vm2 = vmor %vm308_vm1, %vm309_vm0  ;;  %vm318_vm4 = vweird.f32 %v301_v48 }
 0x10a   : > { %v304_v50 = vmul.f32 %v746_v47, %v303_v49  ;;  %v601_v49 = vld [vmem:[%s1148_s5 + $0xa8] sm:$0xff] }
 0x10c   : > { %v305_v51 = vmul.f32 0.5, %v304_v50 }
 0x10e   : > { %v306_v52 = vsub.f32 1.5, %v305_v51 }
 0x10f   : > { %v748_v53 = vpop.eup %747 }
 0x110   : > { %v307_v54 = vmul.f32 %v746_v47, %v306_v52  ;;  %v313_v55 = vmul.f32 %v748_v53, %v301_v48  ;;  %vm319_vm3 = vweird.f32 %v748_v53  ;;  %v585_v48 = vld [vmem:[%s1148_s5 + $0x28] sm:$0xff]  ;;  %v584_v52 = vld [vmem:[%s1148_s5 + $0x20] sm:$0xff] }
 0x111   : > { %vm320_vm5 = vmor %vm318_vm4, %vm319_vm3  ;;  %626 = vmatpush.msra.mxu2 %v585_v48 }
 0x112   : > { %v314_v57 = vmul.f32 %v748_v53, %v313_v55  ;;  %v311_v58 = vsel %vm310_vm2, %v746_v47, %v307_v54 }
 0x113   : > { %v322_v59 = vmul.f32 %v311_v58, %v849_v8  ;;  %v368_v8 = vld [vmem:[%s1147_s4] sm:$0x3]  ;;  %627 = vmatpush.msra.mxu2 %v584_v52 }
 0x114   : > { %v315_v61 = vmul.f32 0.5, %v314_v57  ;;  %v370_v13 = vperm.slane %v368_v8, 0  ;;  %v371_v14 = vperm.slane %v368_v8, 1  ;;  %v599_v57 = vld [vmem:[%s1148_s5 + $0x98] sm:$0xff]  ;;  %v597_v8 = vld [vmem:[%s1148_s5 + $0x88] sm:$0xff] }
 0x115   : > { %v328_v62 = vmul.f32 %v742_v56, %v322_v59 }
 0x116   : > { %v316_v63 = vsub.f32 1.5, %v315_v61 }
 0x117   : > { %v334_v2 = vadd.f32 %v743_v60, %v328_v62 }
 0x118   : > { %v317_v3 = vmul.f32 %v748_v53, %v316_v63  ;;  %v582_v63 = vld [vmem:[%s1148_s5 + $0x10] sm:$0xff] }
 0x119   : > { %390 = vmatmul.f32.vlgmr.msra.gmra.mxu0 %v334_v2  ;;  %413 = vmatmul.f32.vlgmr.msra.gmra.mxu1 %v334_v2  ;;  %v598_v2 = vld [vmem:[%s1148_s5 + $0x90] sm:$0xff] }
 0x11a   : > { %v321_v4 = vsel %vm320_vm5, %v748_v53, %v317_v3  ;;  %v600_v53 = vld [vmem:[%s1148_s5 + $0xa0] sm:$0xff] }
 0x11b   : > { %v323_v5 = vmul.f32 %v321_v4, %v854_v12  ;;  %v610_v12 = vld [vmem:[%s1148_s5 + $0xf0] sm:$0xff] }
 0x11c   : > { %640 = vmatpush.msra.mxu3 %v610_v12  ;;  %v580_v12 = vld [vmem:[%s1148_s5] sm:$0xff] }
 0x11d   : > { %v329_v6 = vmul.f32 %v742_v56, %v323_v5  ;;  %v583_v56 = vld [vmem:[%s1148_s5 + $0x18] sm:$0xff] }
 0x11e   : > { %641 = vmatpush.msra.mxu3 %v609_v16  ;;  %628 = vmatpush.msra.mxu2 %v583_v56 }
 0x11f   : > { %v335_v7 = vadd.f32 %v743_v60, %v329_v6 }
 0x120   : > { %642 = vmatpush.msra.mxu3 %v608_v18  ;;  %629 = vmatpush.msra.mxu2 %v582_v63 }
 0x121   : > { %393 = vmatmul.f32.gmra.mxu0 %v335_v7  ;;  %416 = vmatmul.f32.gmra.mxu1 %v335_v7  ;;  %v581_v7 = vld [vmem:[%s1148_s5 + $0x8] sm:$0xff] }
 0x122   : > { %643 = vmatpush.msra.mxu3 %v607_v22  ;;  %630 = vmatpush.msra.mxu2 %v581_v7 }
 0x124   : > { %644 = vmatpush.msra.mxu3 %v606_v26  ;;  %631 = vmatpush.msra.mxu2 %v580_v12 }
 0x126   : > { %645 = vmatpush.msra.mxu3 %v605_v30 }
 0x128   : > { %646 = vmatpush.msra.mxu3 %v604_v34 }
 0x12a   : > { %647 = vmatpush.msra.mxu3 %v603_v40 }
 0x12c   : > { %648 = vmatpush.msra.mxu3 %v602_v46 }
 0x12e   : > { %649 = vmatpush.msra.mxu3 %v601_v49 }
 0x130   : > { %650 = vmatpush.msra.mxu3 %v600_v53 }
 0x132   : > { %651 = vmatpush.msra.mxu3 %v599_v57 }
 0x134   : > { %652 = vmatpush.msra.mxu3 %v598_v2 }
 0x136   : > { %653 = vmatpush.msra.mxu3 %v597_v8 }
 0x196   : > { %v391_v19 = vpop.f32.mrf.mxu0  ;;  %v414_v20 = vpop.f32.mrf.mxu1 }
 0x197   : > { %v983_v23 = vadd.f32 %v391_v19, %v370_v13  ;;  %v985_v24 = vadd.f32 %v414_v20, %v371_v14 }
 0x199   : > { %v994_v27 = vmul.f32 0.70710677, %v983_v23  ;;  %v997_v28 = vmul.f32 0.70710677, %v985_v24 }
 0x19b   : > { %v1006_v31 = vand.u32 2147483647, %v994_v27  ;;  %v1009_v32 = vand.u32 2147483647, %v997_v28 }
 0x19d   : > { %v440_v35 = vmul.f32 0.3275911, %v1006_v31  ;;  %v441_v36 = vmul.f32 0.3275911, %v1009_v32  ;;  %v544_v6 = vsub.f32 0.0, %v1006_v31  ;;  %v545_v10 = vsub.f32 0.0, %v1009_v32 }
 0x19e   : > { %v394_v37 = vpop.f32.mrf.mxu0  ;;  %v417_v38 = vpop.f32.mrf.mxu1 }
 0x19f   : > { %v1025_v41 = vadd.f32 1.0, %v440_v35  ;;  %v1027_v42 = vadd.f32 1.0, %v441_v36  ;;  %v1029_v43 = vadd.f32 %v394_v37, %v370_v13  ;;  %v1031_v44 = vadd.f32 %v417_v38, %v371_v14  ;;  %v596_v13 = vld [vmem:[%s1148_s5 + $0x80] sm:$0xff] }
 0x1a0   : > { %v548_v19 = vmul.f32 %v544_v6, %v1006_v31  ;;  %v549_v21 = vmul.f32 %v545_v10, %v1009_v32  ;;  %654 = vmatpush.msra.mxu3 %v596_v13 }
 0x1a1   : > { %749 = vrcp.f32 %v1025_v41  ;;  %v1042_v47 = vmul.f32 0.70710677, %v1029_v43  ;;  %v1051_v50 = vmul.f32 0.70710677, %v1031_v44  ;;  %v459_v11 = vand.u32 2147483648, %v1025_v41 }
 0x1a2   : > { %751 = vrcp.f32 %v1027_v42  ;;  %v457_v15 = vand.u32 2147483647, %v1025_v41  ;;  %v474_v16 = vand.u32 2147483648, %v1027_v42  ;;  %v472_v18 = vand.u32 2147483647, %v1027_v42 }
 0x1a3   : > { %v1054_v51 = vand.u32 2147483647, %v1042_v47  ;;  %v1063_v54 = vand.u32 2147483647, %v1051_v50  ;;  %vm453_vm8 = vweird.f32 %v1025_v41  ;;  %v460_v22 = vor.u32 1.1754944e-38, %v459_v11 }
 0x1a4   : > { %vm468_vm10 = vweird.f32 %v1027_v42  ;;  %vm458_vm11 = vcmp.eq.f32.partialorder %v457_v15, 8.507059e+37  ;;  %v475_v30 = vor.u32 1.1754944e-38, %v474_v16  ;;  %vm473_vm13 = vcmp.eq.f32.partialorder %v472_v18, 8.507059e+37 }
 0x1a5   : > { %v442_v55 = vmul.f32 0.3275911, %v1054_v51  ;;  %v443_v59 = vmul.f32 0.3275911, %v1063_v54  ;;  %v552_v32 = vmul.f32 1.442695, %v548_v19 }
 0x1a6   : > { %v554_v39 = vmul.f32 1.442695, %v549_v21  ;;  %v547_v10 = vsub.f32 0.0, %v1063_v54 }
 0x1a7   : > { %v750_v58 = vpop.eup %749  ;;  %v1074_v62 = vadd.f32 1.0, %v442_v55  ;;  %v1083_v4 = vadd.f32 1.0, %v443_v59 }
 0x1a8   : > { %v752_v60 = vpop.eup %751  ;;  %v449_v61 = vmul.f32 %v750_v58, %v1025_v41  ;;  %vm454_vm6 = vweird.f32 %v750_v58  ;;  %v551_v19 = vmul.f32 %v547_v10, %v1063_v54 }
 0x1a9   : > { %v464_v3 = vmul.f32 %v752_v60, %v1027_v42  ;;  %753 = vrcp.f32 %v1074_v62  ;;  %vm469_vm7 = vweird.f32 %v752_v60  ;;  %vm455_vm9 = vmor %vm453_vm8, %vm454_vm6  ;;  %v487_v46 = vand.u32 2147483647, %v1074_v62 }
 0x1aa   : > { %v450_v5 = vsub.f32 1.0, %v449_v61  ;;  %755 = vrcp.f32 %v1083_v4  ;;  %vm470_vm12 = vmor %vm468_vm10, %vm469_vm7  ;;  %v489_v48 = vand.u32 2147483648, %v1074_v62  ;;  %v504_v53 = vand.u32 2147483648, %v1083_v4 }
 0x1ab   : > { %v465_v9 = vsub.f32 1.0, %v464_v3  ;;  %v502_v57 = vand.u32 2147483647, %v1083_v4  ;;  %vm483_vm0 = vweird.f32 %v1074_v62  ;;  %vm498_vm2 = vweird.f32 %v1083_v4 }
 0x1ac   : > { %v451_v14 = vmul.f32 %v750_v58, %v450_v5  ;;  %v490_v63 = vor.u32 1.1754944e-38, %v489_v48  ;;  %vm488_vm3 = vcmp.eq.f32.partialorder %v487_v46, 8.507059e+37  ;;  %v505_v6 = vor.u32 1.1754944e-38, %v504_v53 }
 0x1ad   : > { %v466_v17 = vmul.f32 %v752_v60, %v465_v9  ;;  %vm503_vm5 = vcmp.eq.f32.partialorder %v502_v57, 8.507059e+37  ;;  %757 = vpow2.f32 %v552_v32  ;;  %v558_v32 = vmul.f32 1.442695, %v551_v19 }
 0x1ae   : > { %v452_v20 = vadd.f32 %v750_v58, %v451_v14  ;;  %759 = vpow2.f32 %v554_v39  ;;  %vm428_vm6 = vcmp.ge.f32.partialorder %v994_v27, 0.0  ;;  %vm429_vm7 = vcmp.ge.f32.partialorder %v997_v28, 0.0 }
 0x1af   : > { %v467_v25 = vadd.f32 %v752_v60, %v466_v17  ;;  %v754_v26 = vpop.eup %753  ;;  %v773_v46 = vmov -1.0   ;;  %v420_v27 = vmul.f32 0.5, %v983_v23  ;;  %v421_v28 = vmul.f32 0.5, %v985_v24 }
 0x1b0   : > { %v456_v29 = vsel %vm455_vm9, %v750_v58, %v452_v20  ;;  %v756_v33 = vpop.eup %755  ;;  %v479_v31 = vmul.f32 %v754_v26, %v1074_v62  ;;  %vm484_vm14 = vweird.f32 %v754_v26  ;;  %v546_v58 = vsub.f32 0.0, %v1054_v51 }
 0x1b1   : > { %v461_v34 = vsel %vm458_vm11, %v460_v22, %v456_v29  ;;  %v471_v35 = vsel %vm470_vm12, %v752_v60, %v467_v25  ;;  %v494_v36 = vmul.f32 %v756_v33, %v1083_v4  ;;  %vm499_vm15 = vweird.f32 %v756_v33  ;;  %vm485_vm1 = vmor %vm483_vm0, %vm484_vm14 }
 0x1b2   : > { %v508_v37 = vmul.f32 1.0614054, %v461_v34  ;;  %v476_v38 = vsel %vm473_vm13, %v475_v30, %v471_v35  ;;  %v480_v40 = vsub.f32 1.0, %v479_v31  ;;  %vm500_vm4 = vmor %vm498_vm2, %vm499_vm15  ;;  %v550_v4 = vmul.f32 %v546_v58, %v1054_v51 }
 0x1b3   : > { %v509_v41 = vmul.f32 1.0614054, %v476_v38  ;;  %v495_v42 = vsub.f32 1.0, %v494_v36  ;;  %v758_v35 = vpop.eup %757  ;;  %vm430_vm8 = vcmp.ge.f32.partialorder %v1042_v47, 0.0  ;;  %vm431_vm9 = vcmp.ge.f32.partialorder %v1051_v50, 0.0 }
 0x1b4   : > { %v512_v45 = vadd.f32 -1.4531521, %v508_v37  ;;  %v481_v52 = vmul.f32 %v754_v26, %v480_v40  ;;  %v556_v30 = vmul.f32 1.442695, %v550_v4  ;;  %v760_v39 = vpop.eup %759  ;;  %v435_v24 = vsel %vm431_vm9, 1.0, %v773_v46 }
 0x1b5   : > { %v513_v49 = vadd.f32 -1.4531521, %v509_v41  ;;  %v496_v56 = vmul.f32 %v756_v33, %v495_v42  ;;  %v744_v50 = vld [vmem:[%s1149_s6] ss:$0 sm:$0xff] }
 0x1b6   : > { %v516_v55 = vmul.f32 %v512_v45, %v461_v34  ;;  %v482_v60 = vadd.f32 %v754_v26, %v481_v52  ;;  %761 = vpow2.f32 %v556_v30 }
 0x1b7   : > { %v517_v59 = vmul.f32 %v513_v49, %v476_v38  ;;  %v497_v2 = vadd.f32 %v756_v33, %v496_v56  ;;  %763 = vpow2.f32 %v558_v32 }
 0x1b8   : > { %v520_v61 = vadd.f32 1.4214138, %v516_v55  ;;  %v486_v5 = vsel %vm485_vm1, %v754_v26, %v482_v60 }
 0x1b9   : > { %v521_v3 = vadd.f32 1.4214138, %v517_v59  ;;  %v491_v8 = vsel %vm488_vm3, %v490_v63, %v486_v5  ;;  %v501_v9 = vsel %vm500_vm4, %v756_v33, %v497_v2 }
 0x1ba   : > { %v524_v7 = vmul.f32 %v520_v61, %v461_v34  ;;  %v510_v12 = vmul.f32 1.0614054, %v491_v8  ;;  %v506_v62 = vsel %vm503_vm5, %v505_v6, %v501_v9  ;;  %v434_v9 = vsel %vm430_vm8, 1.0, %v773_v46 }
 0x1bb   : > { %v525_v11 = vmul.f32 %v521_v3, %v476_v38  ;;  %v511_v14 = vmul.f32 1.0614054, %v506_v62 }
 0x1bc   : > { %v528_v13 = vadd.f32 -0.28449672, %v524_v7  ;;  %v514_v16 = vadd.f32 -1.4531521, %v510_v12  ;;  %v762_v61 = vpop.eup %761  ;;  %v422_v12 = vmul.f32 0.5, %v1029_v43 }
 0x1bd   : > { %v529_v15 = vadd.f32 -0.28449672, %v525_v11  ;;  %v515_v18 = vadd.f32 -1.4531521, %v511_v14  ;;  %v764_v3 = vpop.eup %763 }
 0x1be   : > { %v532_v17 = vmul.f32 %v528_v13, %v461_v34  ;;  %v518_v21 = vmul.f32 %v514_v16, %v491_v8  ;;  %v423_v13 = vmul.f32 0.5, %v1031_v44 }
 0x1bf   : > { %v533_v20 = vmul.f32 %v529_v15, %v476_v38  ;;  %v519_v25 = vmul.f32 %v515_v18, %v506_v62 }
 0x1c0   : > { %v536_v22 = vadd.f32 0.2548296, %v532_v17  ;;  %v522_v29 = vadd.f32 1.4214138, %v518_v21 }
 0x1c1   : > { %v537_v26 = vadd.f32 0.2548296, %v533_v20  ;;  %v523_v31 = vadd.f32 1.4214138, %v519_v25 }
 0x1c2   : > { %v540_v33 = vmul.f32 %v536_v22, %v461_v34  ;;  %v526_v37 = vmul.f32 %v522_v29, %v491_v8  ;;  %v432_v34 = vsel %vm428_vm6, 1.0, %v773_v46 }
 0x1c3   : > { %v541_v36 = vmul.f32 %v537_v26, %v476_v38  ;;  %v527_v40 = vmul.f32 %v523_v31, %v506_v62  ;;  %v433_v38 = vsel %vm429_vm7, 1.0, %v773_v46 }
 0x1c4   : > { %v560_v51 = vmul.f32 %v758_v35, %v540_v33  ;;  %v530_v41 = vadd.f32 -0.28449672, %v526_v37 }
 0x1c5   : > { %v561_v54 = vmul.f32 %v760_v39, %v541_v36  ;;  %v531_v45 = vadd.f32 -0.28449672, %v527_v40 }
 0x1c6   : > { %v564_v42 = vsub.f32 1.0, %v560_v51  ;;  %v534_v49 = vmul.f32 %v530_v41, %v491_v8 }
 0x1c7   : > { %v565_v48 = vsub.f32 1.0, %v561_v54  ;;  %v535_v53 = vmul.f32 %v531_v45, %v506_v62 }
 0x1c8   : > { %v568_v52 = vmul.f32 %v564_v42, %v432_v34  ;;  %v538_v56 = vadd.f32 0.2548296, %v534_v49 }
 0x1c9   : > { %v569_v55 = vmul.f32 %v565_v48, %v433_v38  ;;  %v539_v58 = vadd.f32 0.2548296, %v535_v53 }
 0x1ca   : > { %v572_v57 = vadd.f32 1.0, %v568_v52  ;;  %v542_v60 = vmul.f32 %v538_v56, %v491_v8 }
 0x1cb   : > { %v573_v59 = vadd.f32 1.0, %v569_v55  ;;  %v543_v2 = vmul.f32 %v539_v58, %v506_v62 }
 0x1cc   : > { %v576_v63 = vmul.f32 %v572_v57, %v420_v27  ;;  %v562_v6 = vmul.f32 %v762_v61, %v542_v60 }
 0x1cd   : > { %v577_v5 = vmul.f32 %v573_v59, %v421_v28  ;;  %v563_v7 = vmul.f32 %v764_v3, %v543_v2 }
 0x1ce   : > { %632 = vmatmul.f32.vlgmr.msra.gmra.mxu2 %v576_v63  ;;  %v566_v23 = vsub.f32 1.0, %v562_v6 }
 0x1cf   : > { %655 = vmatmul.f32.vlgmr.msra.gmra.mxu3 %v577_v5  ;;  %v567_v10 = vsub.f32 1.0, %v563_v7 }
 0x1d0   : > { %v570_v11 = vmul.f32 %v566_v23, %v434_v9 }
 0x1d1   : > { %v571_v8 = vmul.f32 %v567_v10, %v435_v24 }
 0x1d2   : > { %v574_v62 = vadd.f32 1.0, %v570_v11 }
 0x1d3   : > { %v575_v47 = vadd.f32 1.0, %v571_v8 }
 0x1d4   : > { %v578_v14 = vmul.f32 %v574_v62, %v422_v12 }
 0x1d5   : > { %v579_v15 = vmul.f32 %v575_v47, %v423_v13 }
 0x1d6   : > { %635 = vmatmul.f32.gmra.mxu2 %v578_v14 }
 0x1d7   : > { %658 = vmatmul.f32.gmra.mxu3 %v579_v15 }
 0x251   : > { %v633_v16 = vpop.f32.mrf.mxu2 }
 0x252   : > { %v634_v4 = vadd.f32 %v744_v50, %v633_v16  ;;  %v656_v17 = vpop.f32.mrf.mxu3 }
 0x254   : > { %v657_v18 = vadd.f32 %v656_v17, %v634_v4 }
 0x256   : > { %v662_v43 = vadd.f32 %v657_v18, %v830_v0 }
 0x258   : > { %664 = vst [vmem:[%s280_s29] sm:$0xff] %v662_v43 }
 0x259   : > { %v636_v44 = vpop.f32.mrf.mxu2 }
 0x25a   : > { %v637_v19 = vadd.f32 %v744_v50, %v636_v44  ;;  %v659_v20 = vpop.f32.mrf.mxu3 }
 0x25c   : > { %v660_v21 = vadd.f32 %v659_v20, %v637_v19 }
 0x25e   : > { %v663_v22 = vadd.f32 %v660_v21, %v833_v1 }
 0x260   : > { %665 = vst [vmem:[%s280_s29 + $0x8] sm:$0xff] %v663_v22 }
 0x261 PF: > { %s17_s24 = sadd.s32 1, %s771_s24  }
 0x262   : > { %p14_p4 = scmp.ge.s32.totalorder %s17_s24, 4  }
 0x264   :  { %16 = sbr.rel (!%p14_p4) target bundleno = 1 (0x1), region = 78 }

</bundles_post_ra>
